<compile_context>
chip_gen: v5e
topology: v5e:2x2
jax: 0.10.0
libtpu: 0.0.40
codegen_flags: <defaults>
</compile_context>

<pallas_src>
import functools

import numpy as np
import jax
import jax.numpy as jnp
from jax.experimental import pallas as pl
from jax.experimental.pallas import tpu as pltpu


def _forest_kernel(x_ref, w_ref, b_ref, sel_ref, bit_ref, sgn_ref, pi_ref,
                   out_ref, *, depth, tl):
    x = x_ref[...]                                                       # (B, F)

    # decision layer for all trees of this block at once (trees stacked on lanes)
    logits = jnp.dot(x, w_ref[0], preferred_element_type=jnp.float32) + b_ref[0]
    d = jax.nn.sigmoid(logits)                                           # (B, TL)

    # routing: one fused MXU push; columns of sel are [layer0 | layer1 | ...],
    # block-diagonal over trees, so g_all[:, k*TL + t*L + leaf] = d[:, t*L + node(k,leaf)]
    g_all = jnp.dot(d, sel_ref[...], preferred_element_type=jnp.float32)  # (B, depth*TL)

    # mu[b, t*L+leaf] = prod_k ( d if path goes left at layer k else 1-d )
    mu = bit_ref[0:1, :] + sgn_ref[0:1, :] * g_all[:, 0:tl]
    for k in range(1, depth):                                            # static unroll (VPU)
        mu = mu * (bit_ref[k:k + 1, :] + sgn_ref[k:k + 1, :]
                   * g_all[:, k * tl:(k + 1) * tl])

    # pi rows are stacked over trees and pre-scaled by 1/n_trees, so this single
    # matmul is the (scaled) sum over the trees of this block.
    out_ref[0, :, :] = jnp.dot(mu, pi_ref[0], preferred_element_type=jnp.float32)


def make_stacked_routing_tables(depth, tree_block):
    """Constant tables encoding heap-ordered routing for `tree_block` trees
    stacked along the lane axis, with the depth layers concatenated on lanes."""
    L = 2 ** depth
    TL = tree_block * L
    sel = np.zeros((TL, depth * TL), np.float32)
    bit = np.zeros((depth, TL), np.float32)
    sgn = np.zeros((depth, TL), np.float32)
    for k in range(depth):
        for t in range(tree_block):
            for leaf in range(L):
                node = (1 << k) + (leaf >> (depth - k))   # heap index at layer k
                sel[t * L + node, k * TL + t * L + leaf] = 1.0
                b = (leaf >> (depth - 1 - k)) & 1         # 0 = left (d), 1 = right (1-d)
                bit[k, t * L + leaf] = float(b)
                sgn[k, t * L + leaf] = 1.0 - 2.0 * b
    return jnp.asarray(sel), jnp.asarray(bit), jnp.asarray(sgn)


def forest_forward(x, masks, ws, bs, pis, depth, tree_block=None):
    T, F, _U = masks.shape
    L = ws.shape[2]
    C = pis.shape[2]
    B = x.shape[0]
    if tree_block is None:
        tree_block = T                 # small T: all trees in one grid step
    assert T % tree_block == 0
    n_blk = T // tree_block
    TL = tree_block * L

    # ---- wrapper-side, parameter-only folding (loop-invariant work) ----
    # fold one-hot feature mask into the decision weight
    w_eff = jnp.einsum('tfu,tul->tfl', masks, ws)                       # (T, F, L)
    w_stk = (w_eff.reshape(n_blk, tree_block, F, L)
             .transpose(0, 2, 1, 3).reshape(n_blk, F, TL))              # (n_blk, F, TL)
    b_stk = bs.reshape(n_blk, tree_block * L).reshape(n_blk, 1, TL)     # (n_blk, 1, TL)
    # precompute softmax(pi) and fold the 1/n_trees average into it
    pi_stk = (jax.nn.softmax(pis, axis=-1) / T).reshape(n_blk, TL, C)   # (n_blk, TL, C)

    sel, bit, sgn = make_stacked_routing_tables(depth, tree_block)

    kernel = functools.partial(_forest_kernel, depth=depth, tl=TL)

    flops = 2 * B * n_blk * (F * TL + TL * depth * TL + TL * C)
    bytes_accessed = 4 * (x.size + w_stk.size + b_stk.size + sel.size
                          + bit.size + sgn.size + pi_stk.size + n_blk * B * C)

    partial = pl.pallas_call(
        kernel,
        out_shape=jax.ShapeDtypeStruct((n_blk, B, C), jnp.float32),
        grid_spec=pltpu.PrefetchScalarGridSpec(
            num_scalar_prefetch=0,
            grid=(n_blk,),
            in_specs=[
                pl.BlockSpec((B, F), lambda i: (0, 0)),            # x (shared)
                pl.BlockSpec((1, F, TL), lambda i: (i, 0, 0)),     # folded weights
                pl.BlockSpec((1, 1, TL), lambda i: (i, 0, 0)),     # biases
                pl.BlockSpec((TL, depth * TL), lambda i: (0, 0)),  # routing select
                pl.BlockSpec((depth, TL), lambda i: (0, 0)),       # routing bit
                pl.BlockSpec((depth, TL), lambda i: (0, 0)),       # routing sign
                pl.BlockSpec((1, TL, C), lambda i: (i, 0, 0)),     # softmax(pi)/T
            ],
            out_specs=pl.BlockSpec((1, B, C), lambda i: (i, 0, 0)),
        ),
        compiler_params=pltpu.CompilerParams(
            dimension_semantics=("parallel",)),    # tree-block axis: usable by both v7x TCs
        cost_estimate=pl.CostEstimate(
            flops=flops,
            transcendentals=B * T * L,
            bytes_accessed=bytes_accessed),
    )(x, w_stk, b_stk, sel, bit, sgn, pi_stk)

    # per-block partial sums already carry the 1/n_trees factor; reduce in wrapper.
    return partial.sum(axis=0)


def ref_forest(x, masks, ws, bs, pis, depth):
    """Pure-JAX mirror of the PyTorch Forest/Tree forward (interleaved routing)."""
    T = masks.shape[0]
    B = x.shape[0]
    L = 2 ** depth
    preds = []
    for t in range(T):
        feats = x @ masks[t]
        d = jax.nn.sigmoid(feats @ ws[t] + bs[t, 0])
        dd = jnp.stack([d, 1.0 - d], axis=2)                 # (B, L, 2)
        mu = jnp.ones((B, 1, 1), jnp.float32)
        begin, end = 1, 2
        for k in range(depth):
            mu = jnp.repeat(mu.reshape(B, -1, 1), 2, axis=2)
            mu = mu * dd[:, begin:end, :]
            begin, end = end, end + 2 ** (k + 1)
        mu = mu.reshape(B, L)
        pi = jax.nn.softmax(pis[t], axis=-1)
        preds.append(mu @ pi)
    return sum(preds) / T


if __name__ == "__main__":
    # conf: n_trees=4, tree_depth=4, n_in_feature=32, used_feature_rate=0.5, n_class=8
    T, depth, F, C, B = 4, 4, 32, 8, 8
    U = F // 2
    L = 2 ** depth

    key = jax.random.PRNGKey(0)
    k_x, k_mask, k_w, k_b, k_pi = jax.random.split(key, 5)

    x = jax.random.normal(k_x, (B, F), jnp.float32)

    # per-tree one-hot feature selection masks (F, U)
    mask_keys = jax.random.split(k_mask, T)
    masks = jnp.stack([
        jax.nn.one_hot(
            jax.random.choice(mask_keys[t], F, (U,), replace=False),
            F, dtype=jnp.float32).T
        for t in range(T)
    ])                                                    # (T, F, U)

    ws = jax.random.normal(k_w, (T, U, L), jnp.float32) * 0.3
    bs = jax.random.normal(k_b, (T, 1, L), jnp.float32) * 0.1
    pis = jax.random.normal(k_pi, (T, L, C), jnp.float32)

    out = forest_forward(x, masks, ws, bs, pis, depth)
    out = jax.block_until_ready(out)

    ref = ref_forest(x, masks, ws, bs, pis, depth)
    np.testing.assert_allclose(np.asarray(out), np.asarray(ref),
                               rtol=1e-5, atol=1e-5)
    print("KERNEL_OK")
</pallas_src>

<mosaic_0001>
module attributes {stable_mosaic.version = 11 : i64} {
  func.func @_forest_kernel(%arg0: i32, %arg1: memref<8x32xf32, #tpu.memory_space<vmem>>, %arg2: memref<1x32x64xf32, #tpu.memory_space<vmem>>, %arg3: memref<1x1x64xf32, #tpu.memory_space<vmem>>, %arg4: memref<64x256xf32, #tpu.memory_space<vmem>>, %arg5: memref<4x64xf32, #tpu.memory_space<vmem>>, %arg6: memref<4x64xf32, #tpu.memory_space<vmem>>, %arg7: memref<1x64x8xf32, #tpu.memory_space<vmem>>, %arg8: memref<1x8x8xf32, #tpu.memory_space<vmem>>) attributes {dimension_semantics = [#tpu.dimension_semantics<parallel>], iteration_bounds = array<i64: 1>, scalar_prefetch = 0 : i64, scratch_operands = 0 : i64, tpu.core_type = #tpu.core_type<tc>, window_params = [{pipeline_mode = #tpu.pipeline_mode<synchronous>, transform_indices = @transform_0, window_bounds = array<i64: 8, 32>}, {transform_indices = @transform_1, window_bounds = array<i64: 1, 32, 64>}, {transform_indices = @transform_2, window_bounds = array<i64: 1, 1, 64>}, {pipeline_mode = #tpu.pipeline_mode<synchronous>, transform_indices = @transform_3, window_bounds = array<i64: 64, 256>}, {pipeline_mode = #tpu.pipeline_mode<synchronous>, transform_indices = @transform_4, window_bounds = array<i64: 4, 64>}, {pipeline_mode = #tpu.pipeline_mode<synchronous>, transform_indices = @transform_5, window_bounds = array<i64: 4, 64>}, {transform_indices = @transform_6, window_bounds = array<i64: 1, 64, 8>}, {transform_indices = @transform_7, window_bounds = array<i64: 1, 8, 8>}]} {
    %c0 = arith.constant 0 : index
    %c0_0 = arith.constant 0 : index
    %0 = vector.load %arg1[%c0, %c0_0] : memref<8x32xf32, #tpu.memory_space<vmem>>, vector<8x32xf32>
    %c0_1 = arith.constant 0 : index
    %c0_2 = arith.constant 0 : index
    %c0_3 = arith.constant 0 : index
    %1 = vector.load %arg2[%c0_1, %c0_2, %c0_3] : memref<1x32x64xf32, #tpu.memory_space<vmem>>, vector<1x32x64xf32>
    %2 = vector.shape_cast %1 : vector<1x32x64xf32> to vector<32x64xf32>
    %cst = arith.constant dense<0.000000e+00> : vector<8x64xf32>
    %3 = tpu.matmul %0, %2, %cst {dimension_numbers = #tpu.dot_dimension_numbers<[1], [0], [0], [1], [0, 0, 1, 1], [], []>} : vector<8x32xf32>, vector<32x64xf32>, vector<8x64xf32> -> vector<8x64xf32>
    %c0_4 = arith.constant 0 : index
    %c0_5 = arith.constant 0 : index
    %c0_6 = arith.constant 0 : index
    %4 = vector.load %arg3[%c0_4, %c0_5, %c0_6] : memref<1x1x64xf32, #tpu.memory_space<vmem>>, vector<1x1x64xf32>
    %5 = vector.shape_cast %4 : vector<1x1x64xf32> to vector<1x64xf32>
    %6 = vector.broadcast %5 : vector<1x64xf32> to vector<8x64xf32>
    %7 = arith.addf %3, %6 : vector<8x64xf32>
    %8 = arith.negf %7 : vector<8x64xf32>
    %9 = math.exp %8 : vector<8x64xf32>
    %cst_7 = arith.constant 1.000000e+00 : f32
    %10 = vector.broadcast %cst_7 : f32 to vector<8x64xf32>
    %11 = arith.addf %10, %9 : vector<8x64xf32>
    %12 = arith.divf %10, %11 : vector<8x64xf32>
    %c0_8 = arith.constant 0 : index
    %c0_9 = arith.constant 0 : index
    %13 = vector.load %arg4[%c0_8, %c0_9] : memref<64x256xf32, #tpu.memory_space<vmem>>, vector<64x256xf32>
    %cst_10 = arith.constant dense<0.000000e+00> : vector<8x256xf32>
    %14 = tpu.matmul %12, %13, %cst_10 {dimension_numbers = #tpu.dot_dimension_numbers<[1], [0], [0], [1], [0, 0, 1, 1], [], []>} : vector<8x64xf32>, vector<64x256xf32>, vector<8x256xf32> -> vector<8x256xf32>
    %c0_11 = arith.constant 0 : index
    %c0_12 = arith.constant 0 : index
    %15 = vector.load %arg5[%c0_11, %c0_12] : memref<4x64xf32, #tpu.memory_space<vmem>>, vector<1x64xf32>
    %c0_13 = arith.constant 0 : index
    %c0_14 = arith.constant 0 : index
    %16 = vector.load %arg6[%c0_13, %c0_14] : memref<4x64xf32, #tpu.memory_space<vmem>>, vector<1x64xf32>
    %17 = vector.extract_strided_slice %14 {offsets = [0, 0], sizes = [8, 64], strides = [1, 1]} : vector<8x256xf32> to vector<8x64xf32>
    %18 = vector.broadcast %16 : vector<1x64xf32> to vector<8x64xf32>
    %19 = arith.mulf %18, %17 : vector<8x64xf32>
    %20 = vector.broadcast %15 : vector<1x64xf32> to vector<8x64xf32>
    %21 = arith.addf %20, %19 : vector<8x64xf32>
    %c1 = arith.constant 1 : index
    %c0_15 = arith.constant 0 : index
    %22 = vector.load %arg5[%c1, %c0_15] : memref<4x64xf32, #tpu.memory_space<vmem>>, vector<1x64xf32>
    %c1_16 = arith.constant 1 : index
    %c0_17 = arith.constant 0 : index
    %23 = vector.load %arg6[%c1_16, %c0_17] : memref<4x64xf32, #tpu.memory_space<vmem>>, vector<1x64xf32>
    %24 = vector.extract_strided_slice %14 {offsets = [0, 64], sizes = [8, 64], strides = [1, 1]} : vector<8x256xf32> to vector<8x64xf32>
    %25 = vector.broadcast %23 : vector<1x64xf32> to vector<8x64xf32>
    %26 = arith.mulf %25, %24 : vector<8x64xf32>
    %27 = vector.broadcast %22 : vector<1x64xf32> to vector<8x64xf32>
    %28 = arith.addf %27, %26 : vector<8x64xf32>
    %29 = arith.mulf %21, %28 : vector<8x64xf32>
    %c2 = arith.constant 2 : index
    %c0_18 = arith.constant 0 : index
    %30 = vector.load %arg5[%c2, %c0_18] : memref<4x64xf32, #tpu.memory_space<vmem>>, vector<1x64xf32>
    %c2_19 = arith.constant 2 : index
    %c0_20 = arith.constant 0 : index
    %31 = vector.load %arg6[%c2_19, %c0_20] : memref<4x64xf32, #tpu.memory_space<vmem>>, vector<1x64xf32>
    %32 = vector.extract_strided_slice %14 {offsets = [0, 128], sizes = [8, 64], strides = [1, 1]} : vector<8x256xf32> to vector<8x64xf32>
    %33 = vector.broadcast %31 : vector<1x64xf32> to vector<8x64xf32>
    %34 = arith.mulf %33, %32 : vector<8x64xf32>
    %35 = vector.broadcast %30 : vector<1x64xf32> to vector<8x64xf32>
    %36 = arith.addf %35, %34 : vector<8x64xf32>
    %37 = arith.mulf %29, %36 : vector<8x64xf32>
    %c3 = arith.constant 3 : index
    %c0_21 = arith.constant 0 : index
    %38 = vector.load %arg5[%c3, %c0_21] : memref<4x64xf32, #tpu.memory_space<vmem>>, vector<1x64xf32>
    %c3_22 = arith.constant 3 : index
    %c0_23 = arith.constant 0 : index
    %39 = vector.load %arg6[%c3_22, %c0_23] : memref<4x64xf32, #tpu.memory_space<vmem>>, vector<1x64xf32>
    %40 = vector.extract_strided_slice %14 {offsets = [0, 192], sizes = [8, 64], strides = [1, 1]} : vector<8x256xf32> to vector<8x64xf32>
    %41 = vector.broadcast %39 : vector<1x64xf32> to vector<8x64xf32>
    %42 = arith.mulf %41, %40 : vector<8x64xf32>
    %43 = vector.broadcast %38 : vector<1x64xf32> to vector<8x64xf32>
    %44 = arith.addf %43, %42 : vector<8x64xf32>
    %45 = arith.mulf %37, %44 : vector<8x64xf32>
    %c0_24 = arith.constant 0 : index
    %c0_25 = arith.constant 0 : index
    %c0_26 = arith.constant 0 : index
    %46 = vector.load %arg7[%c0_24, %c0_25, %c0_26] : memref<1x64x8xf32, #tpu.memory_space<vmem>>, vector<1x64x8xf32>
    %47 = vector.shape_cast %46 : vector<1x64x8xf32> to vector<64x8xf32>
    %cst_27 = arith.constant dense<0.000000e+00> : vector<8x8xf32>
    %48 = tpu.matmul %45, %47, %cst_27 {dimension_numbers = #tpu.dot_dimension_numbers<[1], [0], [0], [1], [0, 0, 1, 1], [], []>} : vector<8x64xf32>, vector<64x8xf32>, vector<8x8xf32> -> vector<8x8xf32>
    %c0_28 = arith.constant 0 : index
    %c0_29 = arith.constant 0 : index
    %c0_30 = arith.constant 0 : index
    %49 = vector.load %arg8[%c0_28, %c0_29, %c0_30] : memref<1x8x8xf32, #tpu.memory_space<vmem>>, vector<1x8x8xf32>
    %50 = vector.shape_cast %49 : vector<1x8x8xf32> to vector<8x8xf32>
    %51 = vector.shape_cast %48 : vector<8x8xf32> to vector<1x8x8xf32>
    tpu.vector_store %arg8[%c0_28, %c0_29, %c0_30], %51 {strides = array<i32>} : memref<1x8x8xf32, #tpu.memory_space<vmem>>, vector<1x8x8xf32>,
    return
  }
  func.func @transform_0(%arg0: i32) -> (i32, i32) {
    %c0_i32 = arith.constant 0 : i32
    %c0_i32_0 = arith.constant 0 : i32
    %c0_i32_1 = arith.constant 0 : i32
    return %c0_i32, %c0_i32_0 : i32, i32
  }
  func.func @transform_1(%arg0: i32) -> (i32, i32, i32) {
    %c0_i32 = arith.constant 0 : i32
    %c0_i32_0 = arith.constant 0 : i32
    %c0_i32_1 = arith.constant 0 : i32
    return %arg0, %c0_i32, %c0_i32_0 : i32, i32, i32
  }
  func.func @transform_2(%arg0: i32) -> (i32, i32, i32) {
    %c0_i32 = arith.constant 0 : i32
    %c0_i32_0 = arith.constant 0 : i32
    %c0_i32_1 = arith.constant 0 : i32
    return %arg0, %c0_i32, %c0_i32_0 : i32, i32, i32
  }
  func.func @transform_3(%arg0: i32) -> (i32, i32) {
    %c0_i32 = arith.constant 0 : i32
    %c0_i32_0 = arith.constant 0 : i32
    %c0_i32_1 = arith.constant 0 : i32
    return %c0_i32, %c0_i32_0 : i32, i32
  }
  func.func @transform_4(%arg0: i32) -> (i32, i32) {
    %c0_i32 = arith.constant 0 : i32
    %c0_i32_0 = arith.constant 0 : i32
    %c0_i32_1 = arith.constant 0 : i32
    return %c0_i32, %c0_i32_0 : i32, i32
  }
  func.func @transform_5(%arg0: i32) -> (i32, i32) {
    %c0_i32 = arith.constant 0 : i32
    %c0_i32_0 = arith.constant 0 : i32
    %c0_i32_1 = arith.constant 0 : i32
    return %c0_i32, %c0_i32_0 : i32, i32
  }
  func.func @transform_6(%arg0: i32) -> (i32, i32, i32) {
    %c0_i32 = arith.constant 0 : i32
    %c0_i32_0 = arith.constant 0 : i32
    %c0_i32_1 = arith.constant 0 : i32
    return %arg0, %c0_i32, %c0_i32_0 : i32, i32, i32
  }
  func.func @transform_7(%arg0: i32) -> (i32, i32, i32) {
    %c0_i32 = arith.constant 0 : i32
    %c0_i32_0 = arith.constant 0 : i32
    %c0_i32_1 = arith.constant 0 : i32
    return %arg0, %c0_i32, %c0_i32_0 : i32, i32, i32
  }
}

</mosaic_0001>

<bundles_post_ra>
// kernel: tpu_custom_call.1
= control target key start
LH: loop header
LB: loop body
LE: loop exit
PB: predicated region body
PF: predicated region fallthrough
CT: control target
= control target key end

     0   :  { %12 = vsyncpa [#allocation3], 0  ;;  %s435_s0 = inlined_call_operand.vmem [shape: f32[8,32], index: 0, kind: input, shape index: {}]   ;;  %s436_s1 = inlined_call_operand.vmem [shape: f32[1,32,64], index: 1, kind: input, shape index: {}]   ;;  %s437_s2 = inlined_call_operand.vmem [shape: f32[1,1,64], index: 2, kind: input, shape index: {}]   ;;  %s438_s3 = inlined_call_operand.hbm [shape: f32[64,256], index: 3, kind: input, shape index: {}]   ;;  %s439_s4 = inlined_call_operand.vmem [shape: f32[4,64], index: 4, kind: input, shape index: {}]   ;;  %s440_s5 = inlined_call_operand.vmem [shape: f32[4,64], index: 5, kind: input, shape index: {}]   ;;  %s441_s6 = inlined_call_operand.vmem [shape: f32[1,64,8], index: 6, kind: input, shape index: {}]   ;;  %s442_s7 = inlined_call_operand.hbm [shape: f32[1,8,8], index: 7, kind: output, shape index: {}]  }
   0x1   :  { %13 = vsyncpa [#allocation4], 0  ;;  %s24_s26 = sshll.u32 %s438_s3, 4  ;;  %s315_s27 = smov [#allocation2]   ;;  %s25_s26 = int_to_ptr.hbm [resolvable:$true] %s24_s26 }
   0x2   :  { %s26_s28 = sshll.u32 %s315_s27, 4  ;;  %s316_s29 = smov 256   ;;  %s27_s28 = int_to_ptr.vmem [resolvable:$true] %s26_s28 }
   0x3   :  { %s317_s30 = smov 16  }
   0x4   :  { %32 = dma.hbm_to_vmem [thread:$0]  %s25_s26, 2048, %s27_s28, [#allocation3], %s316_s29, %s316_s29, %s317_s30  }
   0x5   :  { %311 = dma.done.wait [#allocation3], 2048  }
   0x6   :  { %312 = vsyncadd [#allocation3], 4294965248  ;;  %v47_v0 = vld [vmem:[%s436_s1 + $0x18] sm:$0xff]  ;;  %v46_v1 = vld [vmem:[%s436_s1 + $0x10] sm:$0xff]  ;;  %vm52_vm0 = vcmask 261120   ;;  %vm111_vm4 = vcmask 523264  }
   0x7   :  { %68 = vmatpush.msra.mxu0 %v47_v0  ;;  %v45_v2 = vld [vmem:[%s436_s1 + $0x8] sm:$0xff]  ;;  %v44_v3 = vld [vmem:[%s436_s1] sm:$0xff]  ;;  %v109_v5 = vld [vmem:[#allocation2 + $0x70] sm:$0xff]  ;;  %s318_s18 = smov 64   ;;  %s319_s21 = smov [#allocation5]   ;;  %vm221_vm6 = vcmask 64512  }
   0x8   :  { %v43_v4 = vld [vmem:[%s435_s0] sm:$0xff]  ;;  %v110_v6 = vld [vmem:[#allocation2 + $0x78] sm:$0xff]  ;;  %123 = vmatpush.msra.mxu1 %v109_v5  ;;  %v108_v8 = vld [vmem:[#allocation2 + $0x68] sm:$0xff]  ;;  %s228_s22 = sshll.u32 %s319_s21, 4  ;;  %s230_s25 = sshll.u32 %s442_s7, 4  ;;  %s229_s22 = int_to_ptr.vmem [resolvable:$true] %s228_s22  ;;  %s231_s25 = int_to_ptr.hbm [resolvable:$true] %s230_s25 }
   0x9   :  { %69 = vmatpush.msra.mxu0 %v46_v1  ;;  %v107_v7 = vld [vmem:[#allocation2 + $0x60] sm:$0xff]  ;;  %143 = vmatpush.msra.mxu2 %v110_v6  ;;  %v105_v9 = vld [vmem:[#allocation2 + $0x50] sm:$0xff]  ;;  %v106_v10 = vld [vmem:[#allocation2 + $0x58] sm:$0xff] }
   0xa   :  { %124 = vmatpush.msra.mxu1 %v107_v7  ;;  %v103_v11 = vld [vmem:[#allocation2 + $0x40] sm:$0xff]  ;;  %v104_v12 = vld [vmem:[#allocation2 + $0x48] sm:$0xff]  ;;  %v101_v13 = vld [vmem:[#allocation2 + $0x30] sm:$0xff] }
   0xb   :  { %70 = vmatpush.msra.mxu0 %v45_v2  ;;  %144 = vmatpush.msra.mxu2 %v108_v8  ;;  %v102_v14 = vld [vmem:[#allocation2 + $0x38] sm:$0xff]  ;;  %v99_v15 = vld [vmem:[#allocation2 + $0x20] sm:$0xff]  ;;  %v100_v16 = vld [vmem:[#allocation2 + $0x28] sm:$0xff] }
   0xc   :  { %125 = vmatpush.msra.mxu1 %v105_v9  ;;  %v97_v17 = vld [vmem:[#allocation2 + $0x10] sm:$0xff]  ;;  %v98_v18 = vld [vmem:[#allocation2 + $0x18] sm:$0xff]  ;;  %v95_v19 = vld [vmem:[#allocation2] sm:$0xff] }
   0xd   :  { %71 = vmatpush.msra.mxu0 %v44_v3  ;;  %145 = vmatpush.msra.mxu2 %v106_v10  ;;  %v96_v20 = vld [vmem:[#allocation2 + $0x8] sm:$0xff]  ;;  %v250_v21 = vld [vmem:[%s437_s2] ss:$0 sm:$0xff]  ;;  %v197_v37 = vld [vmem:[%s441_s6 + $0x38] sm:$0xff] }
   0xe   :  { %240 = vmatmul.msk.f32.vlgmr.msra.gmra.mxu0 %vm52_vm0, %v43_v4  ;;  %126 = vmatpush.msra.mxu1 %v103_v11  ;;  %v196_v40 = vld [vmem:[%s441_s6 + $0x30] sm:$0xff]  ;;  %v195_v41 = vld [vmem:[%s441_s6 + $0x28] sm:$0xff]  ;;  %v194_v42 = vld [vmem:[%s441_s6 + $0x20] sm:$0xff] }
   0xf   :  { %146 = vmatpush.msra.mxu2 %v104_v12  ;;  %209 = vmatpush.msra.mxu3 %v197_v37  ;;  %v193_v43 = vld [vmem:[%s441_s6 + $0x18] sm:$0xff]  ;;  %v192_v44 = vld [vmem:[%s441_s6 + $0x10] sm:$0xff]  ;;  %v191_v45 = vld [vmem:[%s441_s6 + $0x8] sm:$0xff] }
  0x10   :  { %127 = vmatpush.msra.mxu1 %v101_v13  ;;  %v190_v46 = vld [vmem:[%s441_s6] sm:$0xff] }
  0x11   :  { %147 = vmatpush.msra.mxu2 %v102_v14  ;;  %210 = vmatpush.msra.mxu3 %v196_v40  ;;  %v251_v47 = vld [vmem:[%s440_s5] ss:$0 sm:$0xff]  ;;  %v253_v48 = vld [vmem:[%s440_s5 + $0x2] ss:$0 sm:$0xff]  ;;  %v255_v49 = vld [vmem:[%s440_s5 + $0x1] ss:$0 sm:$0xff] }
  0x12   :  { %128 = vmatpush.msra.mxu1 %v99_v15  ;;  %v252_v51 = vld [vmem:[%s439_s4] ss:$0 sm:$0xff]  ;;  %v256_v52 = vld [vmem:[%s439_s4 + $0x1] ss:$0 sm:$0xff]  ;;  %v254_v55 = vld [vmem:[%s439_s4 + $0x2] ss:$0 sm:$0xff] }
  0x13   :  { %148 = vmatpush.msra.mxu2 %v100_v16  ;;  %211 = vmatpush.msra.mxu3 %v195_v41  ;;  %v257_v61 = vld [vmem:[%s440_s5 + $0x3] ss:$0 sm:$0xff] }
  0x14   :  { %129 = vmatpush.msra.mxu1 %v97_v17  ;;  %v258_v62 = vld [vmem:[%s439_s4 + $0x3] ss:$0 sm:$0xff] }
  0x15   :  { %149 = vmatpush.msra.mxu2 %v98_v18  ;;  %212 = vmatpush.msra.mxu3 %v194_v42 }
  0x16   :  { %130 = vmatpush.msra.mxu1 %v95_v19 }
  0x17   :  { %150 = vmatpush.msra.mxu2 %v96_v20  ;;  %213 = vmatpush.msra.mxu3 %v193_v43 }
  0x19   :  { %214 = vmatpush.msra.mxu3 %v192_v44 }
  0x1b   :  { %215 = vmatpush.msra.mxu3 %v191_v45 }
  0x1d   :  { %216 = vmatpush.msra.mxu3 %v190_v46 }
  0x8b   :  { %v73_v22 = vpop.f32.mrf.mxu0 }
  0x8c   :  { %v74_v23 = vadd.f32 %v250_v21, %v73_v22 }
  0x8e   :  { %v241_v24 = vmul.f32 -1.442695, %v74_v23 }
  0x90   :  { %259 = vpow2.f32 %v241_v24 }
  0x96   :  { %v260_v25 = vpop.eup %259 }
  0x97   :  { %v79_v26 = vadd.f32 1.0, %v260_v25 }
  0x99   :  { %261 = vrcp.f32 %v79_v26  ;;  %v91_v30 = vand.u32 2147483648, %v79_v26  ;;  %v89_v32 = vand.u32 2147483647, %v79_v26  ;;  %vm85_vm2 = vweird.f32 %v79_v26 }
  0x9b   :  { %v92_v34 = vor.u32 1.1754944e-38, %v91_v30  ;;  %vm90_vm5 = vcmp.eq.f32.partialorder %v89_v32, 8.507059e+37 }
  0x9f   :  { %v262_v27 = vpop.eup %261 }
  0xa0   :  { %v81_v28 = vmul.f32 %v262_v27, %v79_v26  ;;  %vm86_vm1 = vweird.f32 %v262_v27 }
  0xa1   :  { %vm87_vm3 = vmor %vm85_vm2, %vm86_vm1 }
  0xa2   :  { %v82_v29 = vsub.f32 1.0, %v81_v28 }
  0xa4   :  { %v83_v31 = vmul.f32 %v262_v27, %v82_v29 }
  0xa6   :  { %v84_v33 = vadd.f32 %v262_v27, %v83_v31 }
  0xa8   :  { %v88_v35 = vsel %vm87_vm3, %v262_v27, %v84_v33 }
  0xa9   :  { %v93_v36 = vsel %vm90_vm5, %v92_v34, %v88_v35 }
  0xaa   :  { %242 = vmatmul.msk.f32.vlgmr.msra.gmra.mxu1 %vm111_vm4, %v93_v36  ;;  %243 = vmatmul.msk.f32.vlgmr.msra.gmra.mxu2 %vm111_vm4, %v93_v36 }
 0x127   :  { %v132_v38 = vpop.f32.mrf.mxu1 }
 0x128   :  { %165 = vrot.lane.b32.xlu0 %v132_v38, %s318_s18  ;;  %v158_v50 = vmul.f32 %v251_v47, %v132_v38 }
 0x12a   :  { %v160_v57 = vadd.f32 %v252_v51, %v158_v50 }
 0x12d   :  { %v152_v39 = vpop.f32.mrf.mxu2 }
 0x12e   :  { %v175_v54 = vmul.f32 %v253_v48, %v152_v39 }
 0x130   :  { %183 = vrot.lane.b32.xlu0 %v152_v39, %s318_s18  ;;  %v177_v59 = vadd.f32 %v254_v55, %v175_v54 }
 0x19a   :  { %v166_v53 = vpop.permute.xlu0 %165 }
 0x19b   :  { %v168_v56 = vmul.f32 %v255_v49, %v166_v53 }
 0x19d   :  { %v170_v58 = vadd.f32 %v256_v52, %v168_v56 }
 0x19f   :  { %v171_v60 = vmul.f32 %v170_v58, %v160_v57 }
 0x1a1   :  { %v178_v63 = vmul.f32 %v177_v59, %v171_v60 }
 0x1a2   :  { %v184_v0 = vpop.permute.xlu0 %183 }
 0x1a3   :  { %v186_v1 = vmul.f32 %v257_v61, %v184_v0 }
 0x1a5   :  { %v188_v2 = vadd.f32 %v258_v62, %v186_v1 }
 0x1a7   :  { %v189_v3 = vmul.f32 %v188_v2, %v178_v63 }
 0x1a9   :  { %244 = vmatmul.msk.f32.vlgmr.msra.gmra.mxu3 %vm111_vm4, %v189_v3 }
 0x22c   :  { %v218_v4 = vpop.f32.mrf.mxu3 }
 0x22d   :  { %222 = vst.msk [vmem:[#allocation5] sm:$0xff] %vm221_vm6, %v218_v4 }
 0x22e   :  { %233 = dma.vmem_to_hbm [thread:$0]  %s229_s22, 128, %s231_s25, [#allocation4]  }
 0x22f   :  { %313 = dma.done.wait [#allocation4], 128  }
 0x230   :  { %314 = vsyncadd [#allocation4], 4294967168 }
 0x231   :  { %238 = vsyncpa [#allocation3], 1 }
 0x232   :  { %239 = vsyncpa [#allocation4], 1 }

</bundles_post_ra>
